<compile_context>
chip_gen: v7x
topology: tpu7x:2x2x1
jax: 0.10.0
libtpu: 0.0.40
codegen_flags: <defaults>
</compile_context>

<pallas_src>
import functools

import jax
import jax.numpy as jnp
from jax.experimental import pallas as pl
from jax.experimental.pallas import tpu as pltpu


def _rnn_kernel(x_ref, wih_ref, whh_ref, bias_ref, wfc_ref, bfc_ref, out_ref,
                h_ref, *, t_blk):
    """One (batch-chunk, time-chunk) grid step of the tanh-RNN recurrence.

    x_ref:    (B_blk, t_blk, E) f32   streamed input chunk (cast to bf16 here)
    wih_ref:  (E, H)            bf16  (resident across the grid)
    whh_ref:  (H, H)            bf16
    bias_ref: (1, H)            f32   (b_ih + b_hh, pre-summed)
    wfc_ref:  (H, C_PAD)        bf16  (zero-padded to lane-dense width)
    bfc_ref:  (1, C_PAD)        f32   (zero-padded)
    out_ref:  (B_blk, C_PAD)    f32   written only on the last time chunk
    h_ref:    (B_blk, H)        bf16  carried hidden state (VMEM scratch)
    """
    t_idx = pl.program_id(1)

    @pl.when(t_idx == 0)
    def _():
        h_ref[...] = jnp.zeros_like(h_ref)

    wih = wih_ref[...]        # hoisted bf16 weight loads
    whh = whh_ref[...]
    bias = bias_ref[...]      # (1, H) f32, fused recurrence bias

    h = h_ref[...]            # (B_blk, H) bf16 carried hidden state
    for t in range(t_blk):    # static, bounded unroll (t_blk <= 8 per grid step)
        # Input projection: independent of h -> overlaps with the serial chain.
        x_t = x_ref[:, t, :].astype(jnp.bfloat16)                     # (B_blk, E)
        pre = (jnp.dot(x_t, wih, preferred_element_type=jnp.float32)
               + bias
               + jnp.dot(h, whh, preferred_element_type=jnp.float32))
        h = jnp.tanh(pre).astype(jnp.bfloat16)                        # tanh in f32 (v5e-safe)
    h_ref[...] = h

    @pl.when(t_idx == pl.num_programs(1) - 1)
    def _():
        # Dropout is identity in eval mode; final Linear, lane-dense (128-wide) output.
        out_ref[...] = (jnp.dot(h_ref[...], wfc_ref[...],
                                preferred_element_type=jnp.float32)
                        + bfc_ref[...])


def rnn_forward(x, w_ih, w_hh, b_ih, b_hh, w_fc, b_fc, *, t_block=8, b_block=None):
    """x: (B, T, E) float32 (batch_first, matching PyTorch). Returns (B, C) logits."""
    B, T, E = x.shape
    H = w_hh.shape[0]
    C = w_fc.shape[0]
    C_PAD = 128  # lane-dense classifier width

    if b_block is None:
        b_block = B
    assert T % t_block == 0, "T must be a multiple of t_block"
    assert B % b_block == 0, "B must be a multiple of b_block"
    # Keep the streamed x block (8,128)-friendly: either full T or a multiple of 8 rows.
    assert t_block == T or t_block % 8 == 0

    # Small weight-side glue only (no pass over x): right-multiply layout, bf16 MXU operands.
    wih_t = w_ih.T.astype(jnp.bfloat16)                              # (E, H)
    whh_t = w_hh.T.astype(jnp.bfloat16)                              # (H, H)
    bias = (b_ih + b_hh).reshape(1, H).astype(jnp.float32)           # fused recurrence bias
    wfc_t = jnp.zeros((H, C_PAD), jnp.bfloat16).at[:, :C].set(w_fc.T.astype(jnp.bfloat16))
    bfc_p = jnp.zeros((1, C_PAD), jnp.float32).at[:, :C].set(b_fc.astype(jnp.float32))

    grid = (B // b_block, T // t_block)
    kernel = functools.partial(_rnn_kernel, t_blk=t_block)

    out_padded = pl.pallas_call(
        kernel,
        out_shape=jax.ShapeDtypeStruct((B, C_PAD), jnp.float32),
        grid_spec=pltpu.PrefetchScalarGridSpec(
            num_scalar_prefetch=0,
            grid=grid,
            in_specs=[
                # x streamed by time chunk (double-buffered DMA handled by Pallas).
                pl.BlockSpec((b_block, t_block, E), lambda b, t: (b, t, 0)),
                # Weights / biases resident across the whole grid.
                pl.BlockSpec((E, H), lambda b, t: (0, 0)),
                pl.BlockSpec((H, H), lambda b, t: (0, 0)),
                pl.BlockSpec((1, H), lambda b, t: (0, 0)),
                pl.BlockSpec((H, C_PAD), lambda b, t: (0, 0)),
                pl.BlockSpec((1, C_PAD), lambda b, t: (0, 0)),
            ],
            out_specs=pl.BlockSpec((b_block, C_PAD), lambda b, t: (b, 0)),
            scratch_shapes=[pltpu.VMEM((b_block, H), jnp.bfloat16)],   # carried h
        ),
        # Batch axis parallel (v7x: 2 TCs), time axis sequential (recurrence).
        # NOTE: x tiles here are tiny; at larger T*B*E keep the per-block x tile to a
        # few MiB or raise vmem_limit_bytes (v7x: 64 MiB physical / 32 MiB scoped default).
        compiler_params=pltpu.CompilerParams(
            dimension_semantics=("parallel", "arbitrary")),
    )(x, wih_t, whh_t, bias, wfc_t, bfc_p)

    return out_padded[:, :C]


def rnn_reference(x, w_ih, w_hh, b_ih, b_hh, w_fc, b_fc):
    """Pure-JAX f32 reference of the same forward pass (eval mode)."""
    B, T, E = x.shape
    H = w_hh.shape[0]
    h = jnp.zeros((B, H), jnp.float32)
    for t in range(T):
        h = jnp.tanh(x[:, t, :] @ w_ih.T + b_ih + h @ w_hh.T + b_hh)
    return h @ w_fc.T + b_fc


if __name__ == "__main__":
    # Module hyperparameters (defaults of the PyTorch module).
    embedding_dim = 50
    hidden_dim = 32
    num_classes = 2

    # Small input shapes; T=16 with t_block=8 exercises the streamed, carried-h grid.
    B, T = 2, 16

    key = jax.random.PRNGKey(0)
    kx, k1, k2, k3, k4, k5, k6 = jax.random.split(key, 7)

    # Deterministic synthetic parameters (PyTorch init range: U(-1/sqrt(H), 1/sqrt(H))).
    bound = 1.0 / jnp.sqrt(jnp.float32(hidden_dim))
    x = jax.random.normal(kx, (B, T, embedding_dim), jnp.float32)
    w_ih = jax.random.uniform(k1, (hidden_dim, embedding_dim), jnp.float32, -bound, bound)
    w_hh = jax.random.uniform(k2, (hidden_dim, hidden_dim), jnp.float32, -bound, bound)
    b_ih = jax.random.uniform(k3, (hidden_dim,), jnp.float32, -bound, bound)
    b_hh = jax.random.uniform(k4, (hidden_dim,), jnp.float32, -bound, bound)
    w_fc = jax.random.uniform(k5, (num_classes, hidden_dim), jnp.float32, -bound, bound)
    b_fc = jax.random.uniform(k6, (num_classes,), jnp.float32, -bound, bound)

    logits = rnn_forward(x, w_ih, w_hh, b_ih, b_hh, w_fc, b_fc, t_block=8)
    logits = jax.block_until_ready(logits)

    ref = rnn_reference(x, w_ih, w_hh, b_ih, b_hh, w_fc, b_fc)
    assert logits.shape == (B, num_classes)
    # bf16 MXU operands / bf16-carried h with f32 accumulation -> loosened tolerance
    # vs the pure-f32 reference (drift grows slowly with T).
    assert jnp.allclose(logits, ref, atol=3e-2, rtol=3e-2), (logits, ref)

    print("KERNEL_OK")
</pallas_src>

<mosaic_0001>
module attributes {stable_mosaic.version = 11 : i64} {
  func.func @_rnn_kernel(%arg0: i32, %arg1: i32, %arg2: memref<2x8x50xf32, #tpu.memory_space<vmem>>, %arg3: memref<50x32xbf16, #tpu.memory_space<vmem>>, %arg4: memref<32x32xbf16, #tpu.memory_space<vmem>>, %arg5: memref<1x32xf32, #tpu.memory_space<vmem>>, %arg6: memref<32x128xbf16, #tpu.memory_space<vmem>>, %arg7: memref<1x128xf32, #tpu.memory_space<vmem>>, %arg8: memref<2x128xf32, #tpu.memory_space<vmem>>, %arg9: memref<2x32xbf16, #tpu.memory_space<vmem>>) attributes {dimension_semantics = [#tpu.dimension_semantics<parallel>, #tpu.dimension_semantics<arbitrary>], iteration_bounds = array<i64: 1, 2>, scalar_prefetch = 0 : i64, scratch_operands = 1 : i64, tpu.core_type = #tpu.core_type<tc>, window_params = [{transform_indices = @transform_0, window_bounds = array<i64: 2, 8, 50>}, {pipeline_mode = #tpu.pipeline_mode<synchronous>, transform_indices = @transform_1, window_bounds = array<i64: 50, 32>}, {pipeline_mode = #tpu.pipeline_mode<synchronous>, transform_indices = @transform_2, window_bounds = array<i64: 32, 32>}, {pipeline_mode = #tpu.pipeline_mode<synchronous>, transform_indices = @transform_3, window_bounds = array<i64: 1, 32>}, {pipeline_mode = #tpu.pipeline_mode<synchronous>, transform_indices = @transform_4, window_bounds = array<i64: 32, 128>}, {pipeline_mode = #tpu.pipeline_mode<synchronous>, transform_indices = @transform_5, window_bounds = array<i64: 1, 128>}, {transform_indices = @transform_6, window_bounds = array<i64: 2, 128>}]} {
    %c0_i32 = arith.constant 0 : i32
    %0 = arith.cmpi eq, %arg1, %c0_i32 : i32
    %1 = arith.extui %0 : i1 to i32
    %c0_i32_0 = arith.constant 0 : i32
    %2 = arith.cmpi ne, %1, %c0_i32_0 : i32
    scf.if %2 {
      %cst_43 = arith.constant 0.000000e+00 : bf16
      %91 = vector.broadcast %cst_43 : bf16 to vector<2x32xbf16>
      %c0_44 = arith.constant 0 : index
      %c0_45 = arith.constant 0 : index
      %92 = vector.load %arg9[%c0_44, %c0_45] : memref<2x32xbf16, #tpu.memory_space<vmem>>, vector<2x32xbf16>
      tpu.vector_store %arg9[%c0_44, %c0_45], %91 {strides = array<i32>} : memref<2x32xbf16, #tpu.memory_space<vmem>>, vector<2x32xbf16>,
    } else {
    }
    %c0 = arith.constant 0 : index
    %c0_1 = arith.constant 0 : index
    %3 = vector.load %arg3[%c0, %c0_1] : memref<50x32xbf16, #tpu.memory_space<vmem>>, vector<50x32xbf16>
    %c0_2 = arith.constant 0 : index
    %c0_3 = arith.constant 0 : index
    %4 = vector.load %arg4[%c0_2, %c0_3] : memref<32x32xbf16, #tpu.memory_space<vmem>>, vector<32x32xbf16>
    %c0_4 = arith.constant 0 : index
    %c0_5 = arith.constant 0 : index
    %5 = vector.load %arg5[%c0_4, %c0_5] : memref<1x32xf32, #tpu.memory_space<vmem>>, vector<1x32xf32>
    %c0_6 = arith.constant 0 : index
    %c0_7 = arith.constant 0 : index
    %6 = vector.load %arg9[%c0_6, %c0_7] : memref<2x32xbf16, #tpu.memory_space<vmem>>, vector<2x32xbf16>
    %c0_8 = arith.constant 0 : index
    %c0_9 = arith.constant 0 : index
    %c0_10 = arith.constant 0 : index
    %7 = vector.load %arg2[%c0_8, %c0_9, %c0_10] : memref<2x8x50xf32, #tpu.memory_space<vmem>>, vector<2x1x50xf32>
    %8 = vector.shape_cast %7 : vector<2x1x50xf32> to vector<2x50xf32>
    %9 = arith.truncf %8 : vector<2x50xf32> to vector<2x50xbf16>
    %cst = arith.constant dense<0.000000e+00> : vector<2x32xf32>
    %10 = tpu.matmul %9, %3, %cst {dimension_numbers = #tpu.dot_dimension_numbers<[1], [0], [0], [1], [0, 0, 1, 1], [], []>} : vector<2x50xbf16>, vector<50x32xbf16>, vector<2x32xf32> -> vector<2x32xf32>
    %11 = vector.broadcast %5 : vector<1x32xf32> to vector<2x32xf32>
    %12 = arith.addf %10, %11 : vector<2x32xf32>
    %cst_11 = arith.constant dense<0.000000e+00> : vector<2x32xf32>
    %13 = tpu.matmul %6, %4, %cst_11 {dimension_numbers = #tpu.dot_dimension_numbers<[1], [0], [0], [1], [0, 0, 1, 1], [], []>} : vector<2x32xbf16>, vector<32x32xbf16>, vector<2x32xf32> -> vector<2x32xf32>
    %14 = arith.addf %12, %13 : vector<2x32xf32>
    %15 = math.tanh %14 : vector<2x32xf32>
    %16 = arith.truncf %15 : vector<2x32xf32> to vector<2x32xbf16>
    %c0_12 = arith.constant 0 : index
    %c1 = arith.constant 1 : index
    %c0_13 = arith.constant 0 : index
    %17 = vector.load %arg2[%c0_12, %c1, %c0_13] : memref<2x8x50xf32, #tpu.memory_space<vmem>>, vector<2x1x50xf32>
    %18 = vector.shape_cast %17 : vector<2x1x50xf32> to vector<2x50xf32>
    %19 = arith.truncf %18 : vector<2x50xf32> to vector<2x50xbf16>
    %cst_14 = arith.constant dense<0.000000e+00> : vector<2x32xf32>
    %20 = tpu.matmul %19, %3, %cst_14 {dimension_numbers = #tpu.dot_dimension_numbers<[1], [0], [0], [1], [0, 0, 1, 1], [], []>} : vector<2x50xbf16>, vector<50x32xbf16>, vector<2x32xf32> -> vector<2x32xf32>
    %21 = vector.broadcast %5 : vector<1x32xf32> to vector<2x32xf32>
    %22 = arith.addf %20, %21 : vector<2x32xf32>
    %cst_15 = arith.constant dense<0.000000e+00> : vector<2x32xf32>
    %23 = tpu.matmul %16, %4, %cst_15 {dimension_numbers = #tpu.dot_dimension_numbers<[1], [0], [0], [1], [0, 0, 1, 1], [], []>} : vector<2x32xbf16>, vector<32x32xbf16>, vector<2x32xf32> -> vector<2x32xf32>
    %24 = arith.addf %22, %23 : vector<2x32xf32>
    %25 = math.tanh %24 : vector<2x32xf32>
    %26 = arith.truncf %25 : vector<2x32xf32> to vector<2x32xbf16>
    %c0_16 = arith.constant 0 : index
    %c2 = arith.constant 2 : index
    %c0_17 = arith.constant 0 : index
    %27 = vector.load %arg2[%c0_16, %c2, %c0_17] : memref<2x8x50xf32, #tpu.memory_space<vmem>>, vector<2x1x50xf32>
    %28 = vector.shape_cast %27 : vector<2x1x50xf32> to vector<2x50xf32>
    %29 = arith.truncf %28 : vector<2x50xf32> to vector<2x50xbf16>
    %cst_18 = arith.constant dense<0.000000e+00> : vector<2x32xf32>
    %30 = tpu.matmul %29, %3, %cst_18 {dimension_numbers = #tpu.dot_dimension_numbers<[1], [0], [0], [1], [0, 0, 1, 1], [], []>} : vector<2x50xbf16>, vector<50x32xbf16>, vector<2x32xf32> -> vector<2x32xf32>
    %31 = vector.broadcast %5 : vector<1x32xf32> to vector<2x32xf32>
    %32 = arith.addf %30, %31 : vector<2x32xf32>
    %cst_19 = arith.constant dense<0.000000e+00> : vector<2x32xf32>
    %33 = tpu.matmul %26, %4, %cst_19 {dimension_numbers = #tpu.dot_dimension_numbers<[1], [0], [0], [1], [0, 0, 1, 1], [], []>} : vector<2x32xbf16>, vector<32x32xbf16>, vector<2x32xf32> -> vector<2x32xf32>
    %34 = arith.addf %32, %33 : vector<2x32xf32>
    %35 = math.tanh %34 : vector<2x32xf32>
    %36 = arith.truncf %35 : vector<2x32xf32> to vector<2x32xbf16>
    %c0_20 = arith.constant 0 : index
    %c3 = arith.constant 3 : index
    %c0_21 = arith.constant 0 : index
    %37 = vector.load %arg2[%c0_20, %c3, %c0_21] : memref<2x8x50xf32, #tpu.memory_space<vmem>>, vector<2x1x50xf32>
    %38 = vector.shape_cast %37 : vector<2x1x50xf32> to vector<2x50xf32>
    %39 = arith.truncf %38 : vector<2x50xf32> to vector<2x50xbf16>
    %cst_22 = arith.constant dense<0.000000e+00> : vector<2x32xf32>
    %40 = tpu.matmul %39, %3, %cst_22 {dimension_numbers = #tpu.dot_dimension_numbers<[1], [0], [0], [1], [0, 0, 1, 1], [], []>} : vector<2x50xbf16>, vector<50x32xbf16>, vector<2x32xf32> -> vector<2x32xf32>
    %41 = vector.broadcast %5 : vector<1x32xf32> to vector<2x32xf32>
    %42 = arith.addf %40, %41 : vector<2x32xf32>
    %cst_23 = arith.constant dense<0.000000e+00> : vector<2x32xf32>
    %43 = tpu.matmul %36, %4, %cst_23 {dimension_numbers = #tpu.dot_dimension_numbers<[1], [0], [0], [1], [0, 0, 1, 1], [], []>} : vector<2x32xbf16>, vector<32x32xbf16>, vector<2x32xf32> -> vector<2x32xf32>
    %44 = arith.addf %42, %43 : vector<2x32xf32>
    %45 = math.tanh %44 : vector<2x32xf32>
    %46 = arith.truncf %45 : vector<2x32xf32> to vector<2x32xbf16>
    %c0_24 = arith.constant 0 : index
    %c4 = arith.constant 4 : index
    %c0_25 = arith.constant 0 : index
    %47 = vector.load %arg2[%c0_24, %c4, %c0_25] : memref<2x8x50xf32, #tpu.memory_space<vmem>>, vector<2x1x50xf32>
    %48 = vector.shape_cast %47 : vector<2x1x50xf32> to vector<2x50xf32>
    %49 = arith.truncf %48 : vector<2x50xf32> to vector<2x50xbf16>
    %cst_26 = arith.constant dense<0.000000e+00> : vector<2x32xf32>
    %50 = tpu.matmul %49, %3, %cst_26 {dimension_numbers = #tpu.dot_dimension_numbers<[1], [0], [0], [1], [0, 0, 1, 1], [], []>} : vector<2x50xbf16>, vector<50x32xbf16>, vector<2x32xf32> -> vector<2x32xf32>
    %51 = vector.broadcast %5 : vector<1x32xf32> to vector<2x32xf32>
    %52 = arith.addf %50, %51 : vector<2x32xf32>
    %cst_27 = arith.constant dense<0.000000e+00> : vector<2x32xf32>
    %53 = tpu.matmul %46, %4, %cst_27 {dimension_numbers = #tpu.dot_dimension_numbers<[1], [0], [0], [1], [0, 0, 1, 1], [], []>} : vector<2x32xbf16>, vector<32x32xbf16>, vector<2x32xf32> -> vector<2x32xf32>
    %54 = arith.addf %52, %53 : vector<2x32xf32>
    %55 = math.tanh %54 : vector<2x32xf32>
    %56 = arith.truncf %55 : vector<2x32xf32> to vector<2x32xbf16>
    %c0_28 = arith.constant 0 : index
    %c5 = arith.constant 5 : index
    %c0_29 = arith.constant 0 : index
    %57 = vector.load %arg2[%c0_28, %c5, %c0_29] : memref<2x8x50xf32, #tpu.memory_space<vmem>>, vector<2x1x50xf32>
    %58 = vector.shape_cast %57 : vector<2x1x50xf32> to vector<2x50xf32>
    %59 = arith.truncf %58 : vector<2x50xf32> to vector<2x50xbf16>
    %cst_30 = arith.constant dense<0.000000e+00> : vector<2x32xf32>
    %60 = tpu.matmul %59, %3, %cst_30 {dimension_numbers = #tpu.dot_dimension_numbers<[1], [0], [0], [1], [0, 0, 1, 1], [], []>} : vector<2x50xbf16>, vector<50x32xbf16>, vector<2x32xf32> -> vector<2x32xf32>
    %61 = vector.broadcast %5 : vector<1x32xf32> to vector<2x32xf32>
    %62 = arith.addf %60, %61 : vector<2x32xf32>
    %cst_31 = arith.constant dense<0.000000e+00> : vector<2x32xf32>
    %63 = tpu.matmul %56, %4, %cst_31 {dimension_numbers = #tpu.dot_dimension_numbers<[1], [0], [0], [1], [0, 0, 1, 1], [], []>} : vector<2x32xbf16>, vector<32x32xbf16>, vector<2x32xf32> -> vector<2x32xf32>
    %64 = arith.addf %62, %63 : vector<2x32xf32>
    %65 = math.tanh %64 : vector<2x32xf32>
    %66 = arith.truncf %65 : vector<2x32xf32> to vector<2x32xbf16>
    %c0_32 = arith.constant 0 : index
    %c6 = arith.constant 6 : index
    %c0_33 = arith.constant 0 : index
    %67 = vector.load %arg2[%c0_32, %c6, %c0_33] : memref<2x8x50xf32, #tpu.memory_space<vmem>>, vector<2x1x50xf32>
    %68 = vector.shape_cast %67 : vector<2x1x50xf32> to vector<2x50xf32>
    %69 = arith.truncf %68 : vector<2x50xf32> to vector<2x50xbf16>
    %cst_34 = arith.constant dense<0.000000e+00> : vector<2x32xf32>
    %70 = tpu.matmul %69, %3, %cst_34 {dimension_numbers = #tpu.dot_dimension_numbers<[1], [0], [0], [1], [0, 0, 1, 1], [], []>} : vector<2x50xbf16>, vector<50x32xbf16>, vector<2x32xf32> -> vector<2x32xf32>
    %71 = vector.broadcast %5 : vector<1x32xf32> to vector<2x32xf32>
    %72 = arith.addf %70, %71 : vector<2x32xf32>
    %cst_35 = arith.constant dense<0.000000e+00> : vector<2x32xf32>
    %73 = tpu.matmul %66, %4, %cst_35 {dimension_numbers = #tpu.dot_dimension_numbers<[1], [0], [0], [1], [0, 0, 1, 1], [], []>} : vector<2x32xbf16>, vector<32x32xbf16>, vector<2x32xf32> -> vector<2x32xf32>
    %74 = arith.addf %72, %73 : vector<2x32xf32>
    %75 = math.tanh %74 : vector<2x32xf32>
    %76 = arith.truncf %75 : vector<2x32xf32> to vector<2x32xbf16>
    %c0_36 = arith.constant 0 : index
    %c7 = arith.constant 7 : index
    %c0_37 = arith.constant 0 : index
    %77 = vector.load %arg2[%c0_36, %c7, %c0_37] : memref<2x8x50xf32, #tpu.memory_space<vmem>>, vector<2x1x50xf32>
    %78 = vector.shape_cast %77 : vector<2x1x50xf32> to vector<2x50xf32>
    %79 = arith.truncf %78 : vector<2x50xf32> to vector<2x50xbf16>
    %cst_38 = arith.constant dense<0.000000e+00> : vector<2x32xf32>
    %80 = tpu.matmul %79, %3, %cst_38 {dimension_numbers = #tpu.dot_dimension_numbers<[1], [0], [0], [1], [0, 0, 1, 1], [], []>} : vector<2x50xbf16>, vector<50x32xbf16>, vector<2x32xf32> -> vector<2x32xf32>
    %81 = vector.broadcast %5 : vector<1x32xf32> to vector<2x32xf32>
    %82 = arith.addf %80, %81 : vector<2x32xf32>
    %cst_39 = arith.constant dense<0.000000e+00> : vector<2x32xf32>
    %83 = tpu.matmul %76, %4, %cst_39 {dimension_numbers = #tpu.dot_dimension_numbers<[1], [0], [0], [1], [0, 0, 1, 1], [], []>} : vector<2x32xbf16>, vector<32x32xbf16>, vector<2x32xf32> -> vector<2x32xf32>
    %84 = arith.addf %82, %83 : vector<2x32xf32>
    %85 = math.tanh %84 : vector<2x32xf32>
    %86 = arith.truncf %85 : vector<2x32xf32> to vector<2x32xbf16>
    %c0_40 = arith.constant 0 : index
    %c0_41 = arith.constant 0 : index
    %87 = vector.load %arg9[%c0_40, %c0_41] : memref<2x32xbf16, #tpu.memory_space<vmem>>, vector<2x32xbf16>
    tpu.vector_store %arg9[%c0_40, %c0_41], %86 {strides = array<i32>} : memref<2x32xbf16, #tpu.memory_space<vmem>>, vector<2x32xbf16>,
    %c1_i32 = arith.constant 1 : i32
    %88 = arith.cmpi eq, %arg1, %c1_i32 : i32
    %89 = arith.extui %88 : i1 to i32
    %c0_i32_42 = arith.constant 0 : i32
    %90 = arith.cmpi ne, %89, %c0_i32_42 : i32
    scf.if %90 {
      %c0_43 = arith.constant 0 : index
      %c0_44 = arith.constant 0 : index
      %91 = vector.load %arg9[%c0_43, %c0_44] : memref<2x32xbf16, #tpu.memory_space<vmem>>, vector<2x32xbf16>
      %c0_45 = arith.constant 0 : index
      %c0_46 = arith.constant 0 : index
      %92 = vector.load %arg6[%c0_45, %c0_46] : memref<32x128xbf16, #tpu.memory_space<vmem>>, vector<32x128xbf16>
      %cst_47 = arith.constant dense<0.000000e+00> : vector<2x128xf32>
      %93 = tpu.matmul %91, %92, %cst_47 {dimension_numbers = #tpu.dot_dimension_numbers<[1], [0], [0], [1], [0, 0, 1, 1], [], []>} : vector<2x32xbf16>, vector<32x128xbf16>, vector<2x128xf32> -> vector<2x128xf32>
      %c0_48 = arith.constant 0 : index
      %c0_49 = arith.constant 0 : index
      %94 = vector.load %arg7[%c0_48, %c0_49] : memref<1x128xf32, #tpu.memory_space<vmem>>, vector<1x128xf32>
      %95 = vector.broadcast %94 : vector<1x128xf32> to vector<2x128xf32>
      %96 = arith.addf %93, %95 : vector<2x128xf32>
      %c0_50 = arith.constant 0 : index
      %c0_51 = arith.constant 0 : index
      %97 = vector.load %arg8[%c0_50, %c0_51] : memref<2x128xf32, #tpu.memory_space<vmem>>, vector<2x128xf32>
      tpu.vector_store %arg8[%c0_50, %c0_51], %96 {strides = array<i32>} : memref<2x128xf32, #tpu.memory_space<vmem>>, vector<2x128xf32>,
    } else {
    }
    return
  }
  func.func @transform_0(%arg0: i32, %arg1: i32) -> (i32, i32, i32) {
    %c0_i32 = arith.constant 0 : i32
    %c0_i32_0 = arith.constant 0 : i32
    return %arg0, %arg1, %c0_i32 : i32, i32, i32
  }
  func.func @transform_1(%arg0: i32, %arg1: i32) -> (i32, i32) {
    %c0_i32 = arith.constant 0 : i32
    %c0_i32_0 = arith.constant 0 : i32
    %c0_i32_1 = arith.constant 0 : i32
    return %c0_i32, %c0_i32_0 : i32, i32
  }
  func.func @transform_2(%arg0: i32, %arg1: i32) -> (i32, i32) {
    %c0_i32 = arith.constant 0 : i32
    %c0_i32_0 = arith.constant 0 : i32
    %c0_i32_1 = arith.constant 0 : i32
    return %c0_i32, %c0_i32_0 : i32, i32
  }
  func.func @transform_3(%arg0: i32, %arg1: i32) -> (i32, i32) {
    %c0_i32 = arith.constant 0 : i32
    %c0_i32_0 = arith.constant 0 : i32
    %c0_i32_1 = arith.constant 0 : i32
    return %c0_i32, %c0_i32_0 : i32, i32
  }
  func.func @transform_4(%arg0: i32, %arg1: i32) -> (i32, i32) {
    %c0_i32 = arith.constant 0 : i32
    %c0_i32_0 = arith.constant 0 : i32
    %c0_i32_1 = arith.constant 0 : i32
    return %c0_i32, %c0_i32_0 : i32, i32
  }
  func.func @transform_5(%arg0: i32, %arg1: i32) -> (i32, i32) {
    %c0_i32 = arith.constant 0 : i32
    %c0_i32_0 = arith.constant 0 : i32
    %c0_i32_1 = arith.constant 0 : i32
    return %c0_i32, %c0_i32_0 : i32, i32
  }
  func.func @transform_6(%arg0: i32, %arg1: i32) -> (i32, i32) {
    %c0_i32 = arith.constant 0 : i32
    %c0_i32_0 = arith.constant 0 : i32
    return %arg0, %c0_i32 : i32, i32
  }
}

</mosaic_0001>

<bundles_post_ra>
// kernel: tpu_custom_call.1
= control target key start
LH: loop header
LB: loop body
LE: loop exit
PB: predicated region body
PF: predicated region fallthrough
CT: control target
= control target key end

     0   :  { %11 = vsyncpa [#allocation5], 0  ;;  %s2240_s0 = inlined_call_operand.vmem [shape: f32[2,16,50], index: 0, kind: input, shape index: {}]   ;;  %s2241_s1 = inlined_call_operand.vmem [shape: bf16[50,32], index: 1, kind: input, shape index: {}]   ;;  %s2242_s2 = inlined_call_operand.vmem [shape: bf16[32,32], index: 2, kind: input, shape index: {}]   ;;  %s2243_s3 = inlined_call_operand.vmem [shape: f32[1,32], index: 3, kind: input, shape index: {}]   ;;  %s2244_s4 = inlined_call_operand.hbm [shape: bf16[32,128], index: 4, kind: input, shape index: {}]   ;;  %s2245_s5 = inlined_call_operand.vmem [shape: f32[1,128], index: 5, kind: input, shape index: {}]   ;;  %s2246_s6 = inlined_call_operand.hbm [shape: f32[2,128], index: 6, kind: output, shape index: {}]  }
   0x1   :  { %12 = vsyncpa [#allocation6], 0  ;;  %s1885_s21 = smov 0   ;;  %s1887_s22 = smov 0  }
   0x2   :  { %s1889_s23 = smov 0   ;;  %s1891_s24 = smov 0  }
   0x3   :  { %s1893_s25 = smov 0  }
   0x4 LB: > { %s1333_s26 = sadd.s32 4294967295, %s1839_s25   ;;  %s27_s27 = sadd.s32 1, %s1835_s24  ;;  %s1839_s25 = sphi %s1893_s25, %s18_s25   ;;  %s1835_s24 = sphi %s1891_s24, %s2261_s24   ;;  %s1831_s23 = sphi %s1889_s23, %s2260_s23   ;;  %s1827_s22 = sphi %s1887_s22, %s2259_s22   ;;  %s1823_s21 = sphi %s1885_s21, %s2258_s21  }
   0x5   : > { %p28_p0 = scmp.ge.s32.totalorder %s27_s27, 2  ;;  %s39_s28 = sadd.s32 1, %s1827_s22 }
   0x6   : > { %p46_p1 = scmp.ne.s32.totalorder %s1827_s22, %s1823_s21  ;;  %p47_p2 = scmp.eq.s32.totalorder %s1839_s25, 0 }
   0x7   : > { %s2263_s27 = smov (%p28_p0, %s27_s27), 0  ;;  %p1334_p4 = scmp.ge.s32.totalorder %s1839_s25, 1 }
   0x8   : > { %p1918_p3 = por %p47_p2, %p46_p1  ;;  %s35_s30 = ssub.s32 %s1835_s24, %s2263_s27 }
   0x9   : > { %p194_p5 = scmp.lt.s32.totalorder %s1839_s25, 3  ;;  %p37_p6 = scmp.eq.s32.totalorder %s35_s30, 0 }
   0xa   : > { %s2250_s29 = scalar_select %p1918_p3, 1, 0 }
   0xb   : > { %p1926_p7 = pnand %p1334_p4, %p194_p5  ;;  %p1932_p8 = scmp.eq.s32.totalorder %s1333_s26, 0 }
   0xc   : > { %s1937_s9 = scalar_select %p37_p6, %s1827_s22, %s39_s28  }
   0xd   : > { %s2251_s7 = scalar_select %p1926_p7, 1, 0 }
   0xe   : > { %s2252_s8 = scalar_select %p1932_p8, 1, 0 }
   0xf   : > { %p1658_p9 = pneg %p1926_p7  ;;  %s1841_s10 = smov [#allocation4]  }
  0x10   : > { %s215_s11 = sshll.u32 %s1841_s10, 4  ;;  %s1739_s15 = scalar_lea.hbm %s2244_s4, 256  ;;  %s216_s11 = int_to_ptr.vmem [resolvable:$true] %s215_s11 }
  0x11   : > { %p1943_p10 = pnand %p1932_p8, %p1658_p9  ;;  %p1740_p11 = scmp.ne.s32.totalorder %s2244_s4, %s1739_s15 }
  0x12   : > { %p1746_p1 = scmp.lt.u32.totalorder %s1739_s15, %s2244_s4 }
  0x13   : > { %p1741_p12 = pneg %p1943_p10 }
  0x15   : > { %p1742_p13 = pnand %p1741_p12, %p1740_p11 }
  0x17   : > { %p1743_p0 = pneg %p1742_p13 }
  0x19   : > { %p1748_p2 = pnand %p1746_p1, %p1743_p0 }
  0x1b   : > { %1751 = shalt.err (!%p1748_p2)
}
  0x1c   : > { %s1752_s20 = scalar_lea.vmem %s216_s11, 256  ;;  %p1760_p9 = scmp.lt.s32.totalorder %s216_s11, %s216_s11 }
  0x1d   : > { %p1753_p4 = scmp.ne.s32.totalorder %s216_s11, %s1752_s20  ;;  %p1761_p8 = scmp.lt.s32.totalorder %s1752_s20, %s1752_s20 }
  0x1f   : > { %p1755_p5 = pnand %p1753_p4, %p1741_p12  ;;  %p1762_p7 = por %p1761_p8, %p1760_p9 }
  0x21   : > { %p1756_p6 = pneg %p1755_p5 }
  0x23   : > { %p1763_p3 = pnand %p1762_p7, %p1756_p6 }
  0x25   : > { %1766 = shalt.err (!%p1763_p3)
}
  0x26   : > { %s1842_s28 = smov 64   ;;  %s1843_s30 = smov 4  }
  0x27   : > { %1661 = dma.hbm_to_vmem [thread:$0]  (!%p1943_p10), %s2244_s4, 256, %s216_s11, [#allocation5], %s1842_s28, %s1842_s28, %s1843_s30  }
  0x28   : > { %p1336_p11 = scmp.ge.s32.totalorder %s1839_s25, 2 }
  0x29   : > { %p2254_p13 = scmp.ne.s32.totalorder (!%p1336_p11), %s2250_s29, 0 }
  0x2a   : > { %228 = sbr.rel (%p1336_p11) target bundleno = 56 (0x38), region = 36 }
  0x31   : > { %231 = sbr.rel (!%p2254_p13) target bundleno = 56 (0x38), region = 40  ;;  %s233_s14 = sand.u32 (%p2254_p13), 1, %s1827_s22  }
  0x32   : > { %s1338_s15 = sshll.u32 (%p2254_p13), %s1835_s24, 3  ;;  %s1337_s16 = sshll.u32 (%p2254_p13), %s233_s14, 4 }
  0x33   : > { %s240_s19 = scalar_lea.vmem (%p2254_p13), %s2240_s0, %s1338_s15  ;;  %s235_s12 = scalar_lea.vmem (%p2254_p13), [#allocation3], %s1337_s16 }
  0x34   : > { %v270_v0 = vld [vmem:[%s240_s19] sm:$0xff] (%p2254_p13)  ;;  %v272_v1 = vld [vmem:[%s240_s19 + $0x10] sm:$0xff] (%p2254_p13) }
  0x35   : > { %271 = vst [vmem:[%s235_s12] sm:$0xff] (%p2254_p13), %v270_v0  ;;  %273 = vst [vmem:[%s235_s12 + $0x8] sm:$0xff] (%p2254_p13), %v272_v1 }
  0x38 PF: > { %p2255_p3 = scmp.ne.s32.totalorder %s2251_s7, 0 }
  0x39   : > { %s285_s29 = sand.u32 (!%p2255_p3), 1, %s1823_s21   ;;  %p2256_p7 = scmp.ne.s32.totalorder (!%p2255_p3), %s2252_s8, 0 }
  0x3a   : > { %282 = sbr.rel (%p2255_p3) target bundleno = 2168 (0x878), region = 78  ;;  %s1340_s11 = sshll.u32 (!%p2255_p3), %s285_s29, 4 }
  0x3b   : > { %s1974_s20 = scalar_lea.vmem (!%p2255_p3), [#allocation3], %s1340_s11 }
  0x41   : > { %1814 = dma.done.wait (%p2256_p7), [#allocation5], 256  }
  0x42   : > { %1816 = vsyncadd (%p2256_p7), [#allocation5], 4294967040  ;;  %p1342_p8 = scmp.ne.s32.totalorder %s1831_s23, 0 }
  0x43   : > { %vm319_vm0 = vcmask (!%p1342_p8), 253952   ;;  %v1844_v2 = vmov (!%p1342_p8), 0  }
  0x44   : > { %318 = sbr.rel (%p1342_p8) target bundleno = 75 (0x4b), region = 90  ;;  %320 = vst.msk [vmem:[#allocation2] sm:$0x1] (!%p1342_p8), %vm319_vm0, %v1844_v2 }
  0x4b PF: > { %v1984_v3 = vld [vmem:[%s2241_s1] sm:$0xff]   ;;  %v1845_v4 = vmov 0.0   ;;  %v1992_v5 = vld [vmem:[%s2241_s1 + $0x8] sm:$0xff]   ;;  %vm1846_vm1 = vmmov 0   ;;  %v2007_v10 = vld [vmem:[%s2241_s1 + $0x10] sm:$0xff]   ;;  %vm377_vm2 = vcmask 1040384  }
  0x4c   : > { %1442 = vmatprep.subr.bf16.mxu0 %v1845_v4  ;;  %1462 = vmatprep.subr.bf16.mxu1 %v1845_v4  ;;  %v334_v6 = vld [vmem:[%s1974_s20] sm:$0x1]  ;;  %v335_v7 = vld [vmem:[%s1974_s20 + $0x8] sm:$0x1]  ;;  %vm349_vm3 = vcmask 1041409   ;;  %vm373_vm4 = vcmask 408576  }
  0x4d   : > { %1443 = vmatpush3.bf16.msra.mxu0 %v1984_v3  ;;  %1463 = vmatpush3.bf16.msra.mxu1 %v1984_v3  ;;  %v336_v8 = vpack.c.bf16 %v334_v6, %v334_v6  ;;  %v337_v9 = vpack.c.bf16 %v335_v7, %v335_v7  ;;  %v1718_v11 = vld [vmem:[%s2241_s1 + $0x18] ss:$0 sps:$4 sm:$0x11]   ;;  %v2026_v18 = vld [vmem:[%s2242_s2] sm:$0xff]   ;;  %v2036_v19 = vld [vmem:[%s2242_s2 + $0x8] sm:$0xff]   ;;  %vm433_vm5 = vcmask 261120  }
  0x4e   : > { %1444 = vmatprep.subr.bf16.mxu0 %v1845_v4  ;;  %1450 = vmatprep.mubr.msk.bf16.mxu0 %vm1846_vm1, %v1845_v4  ;;  %v2018_v15 = vsel %vm377_vm2, %v1718_v11, 0  ;;  %v333_v20 = vld [vmem:[#allocation2] sm:$0x1]  ;;  %v481_v21 = vld [vmem:[%s1974_s20 + $0x9] sm:$0x1]  ;;  %vm1180_vm6 = vcmask 253952  }
  0x4f   : > { %1464 = vmatprep.subr.bf16.mxu1 %v1845_v4  ;;  %1470 = vmatprep.mubr.msk.bf16.mxu1 %vm1846_vm1, %v1845_v4  ;;  %v346_v12 = vunpack.c.l.b16 %v336_v8  ;;  %v347_v13 = vunpack.c.l.b16 %v337_v9  ;;  %v483_v22 = vpack.c.bf16 %v481_v21, %v481_v21  ;;  %v480_v23 = vld [vmem:[%s1974_s20 + $0x1] sm:$0x1]  ;;  %v2067_v30 = vld [vmem:[%s2243_s3] ss:$0 sm:$0xff]  ;;  %v581_v38 = vld [vmem:[%s1974_s20 + $0xa] sm:$0x1] }
  0x50   : > { %v482_v24 = vpack.c.bf16 %v480_v23, %v480_v23  ;;  %v583_v39 = vpack.c.bf16 %v581_v38, %v581_v38  ;;  %v580_v40 = vld [vmem:[%s1974_s20 + $0x2] sm:$0x1]  ;;  %v681_v54 = vld [vmem:[%s1974_s20 + $0xb] sm:$0x1]  ;;  %v680_v56 = vld [vmem:[%s1974_s20 + $0x3] sm:$0x1] }
  0x51   : > { %1445 = vmatpush3.bf16.msra.mxu0 %v1992_v5  ;;  %1465 = vmatpush3.bf16.msra.mxu1 %v1992_v5  ;;  %v348_v14 = vrot.slane %v347_v13, 7  ;;  %v487_v25 = vunpack.c.l.b16 %v483_v22  ;;  %v582_v41 = vpack.c.bf16 %v580_v40, %v580_v40  ;;  %v683_v55 = vpack.c.bf16 %v681_v54, %v681_v54  ;;  %v781_v9 = vld [vmem:[%s1974_s20 + $0xc] sm:$0x1]  ;;  %p1366_p10 = scmp.ne.s32.totalorder %s1831_s23, 1 }
  0x52   : > { %1446 = vmatprep.subr.bf16.mxu0 %v1845_v4  ;;  %1466 = vmatprep.subr.bf16.mxu1 %v1845_v4  ;;  %v486_v26 = vunpack.c.l.b16 %v482_v24  ;;  %v587_v42 = vunpack.c.l.b16 %v583_v39  ;;  %v682_v57 = vpack.c.bf16 %v680_v56, %v680_v56  ;;  %v783_v11 = vpack.c.bf16 %v781_v9, %v781_v9 }
  0x53   : > { %v350_v16 = vsel %vm349_vm3, %v348_v14, %v346_v12  ;;  %v488_v27 = vrot.slane %v487_v25, 7  ;;  %v586_v43 = vunpack.c.l.b16 %v582_v41  ;;  %v687_v58 = vunpack.c.l.b16 %v683_v55  ;;  %v780_v12 = vld [vmem:[%s1974_s20 + $0x4] sm:$0x1] }
  0x54   : > { %v351_v17 = vpack.c.b16 %v350_v16, %v350_v16  ;;  %v588_v44 = vrot.slane %v587_v42, 7  ;;  %v686_v59 = vunpack.c.l.b16 %v682_v57  ;;  %v782_v13 = vpack.c.bf16 %v780_v12, %v780_v12 }
  0x55   : > { %1447 = vmatpush3.bf16.msra.mxu0 %v2007_v10  ;;  %1467 = vmatpush3.bf16.msra.mxu1 %v2007_v10  ;;  %v489_v28 = vsel %vm349_vm3, %v488_v27, %v486_v26  ;;  %v688_v60 = vrot.slane %v687_v58, 7  ;;  %v787_v14 = vunpack.c.l.b16 %v783_v11  ;;  %v1081_v58 = vld [vmem:[%s1974_s20 + $0xf] sm:$0x1]  ;;  %vm1848_vm7 = vmmov (!%p1366_p10), 0  }
  0x56   : > { %1448 = vmatprep.subr.bf16.mxu0 %v1845_v4  ;;  %1468 = vmatprep.subr.bf16.mxu1 %v1845_v4  ;;  %v490_v29 = vpack.c.b16 %v489_v28, %v489_v28  ;;  %v589_v45 = vsel %vm349_vm3, %v588_v44, %v586_v43  ;;  %v786_v16 = vunpack.c.l.b16 %v782_v13 }
  0x57   : > { %v590_v46 = vpack.c.b16 %v589_v45, %v589_v45  ;;  %v689_v61 = vsel %vm349_vm3, %v688_v60, %v686_v59  ;;  %v1083_v59 = vpack.c.bf16 %v1081_v58, %v1081_v58  ;;  %v1080_v60 = vld [vmem:[%s1974_s20 + $0x7] sm:$0x1] }
  0x58   : > { %v690_v62 = vpack.c.b16 %v689_v61, %v689_v61  ;;  %v1082_v61 = vpack.c.bf16 %v1080_v60, %v1080_v60 }
  0x59   : > { %1449 = vmatpush3.bf16.msra.mxu0 %v2018_v15  ;;  %1469 = vmatpush3.bf16.msra.mxu1 %v2018_v15 }
  0x5a   : > { %1454 = vmatprep.subr.bf16.mxu0 %v1845_v4  ;;  %1474 = vmatprep.subr.bf16.mxu1 %v1845_v4 }
  0x5c   : > { %1451 = vmatmul.mubr.msk.bf16.vlgmr.msra.gmra.mrb[0].mxu0 %vm373_vm4, %v351_v17  ;;  %1471 = vmatmul.mubr.msk.bf16.vlgmr.msra.gmra.mrb[0].mxu1 %vm373_vm4, %v490_v29  ;;  %v788_v17 = vrot.slane %v787_v14, 7  ;;  %v881_v29 = vld [vmem:[%s1974_s20 + $0xd] sm:$0x1] }
  0x5d   : > { %1455 = vmatpush3.bf16.msra.mxu0 %v2026_v18  ;;  %1458 = vmatprep.mubr.msk.bf16.mxu0 %vm1846_vm1, %v1845_v4 }
  0x5e   : > { %1456 = vmatprep.subr.bf16.mxu0 %v1845_v4  ;;  %1475 = vmatpush3.bf16.msra.mxu1 %v2026_v18 }
  0x5f   : > { %1478 = vmatprep.mubr.msk.bf16.mxu1 %vm1846_vm1, %v1845_v4  ;;  %1476 = vmatprep.subr.bf16.mxu1 %v1845_v4 }
  0x61   : > { %1457 = vmatpush3.bf16.msra.mxu0 %v2036_v19 }
  0x62   : > { %1482 = vmatprep.subr.bf16.mxu0 %v1845_v4  ;;  %1477 = vmatpush3.bf16.msra.mxu1 %v2036_v19 }
  0x63   : > { %1502 = vmatprep.subr.bf16.mxu1 %v1845_v4 }
  0x68   : > { %1459 = vmatmul.mubr.msk.bf16.vlgmr.msra.gmra.mrb[0].mxu0 %vm433_vm5, %v333_v20  ;;  %v789_v20 = vsel %vm349_vm3, %v788_v17, %v786_v16 }
  0x69   : > { %1483 = vmatpush3.bf16.msra.mxu0 %v1984_v3  ;;  %1490 = vmatprep.mubr.msk.bf16.mxu0 %vm1846_vm1, %v1845_v4  ;;  %v790_v21 = vpack.c.b16 %v789_v20, %v789_v20 }
  0x6a   : > { %1484 = vmatprep.subr.bf16.mxu0 %v1845_v4 }
  0x6d   : > { %1485 = vmatpush3.bf16.msra.mxu0 %v1992_v5 }
  0x6e   : > { %1486 = vmatprep.subr.bf16.mxu0 %v1845_v4 }
  0x71   : > { %1487 = vmatpush3.bf16.msra.mxu0 %v2007_v10 }
  0x72   : > { %1488 = vmatprep.subr.bf16.mxu0 %v1845_v4 }
  0x75   : > { %1489 = vmatpush3.bf16.msra.mxu0 %v2018_v15 }
  0x76   : > { %1494 = vmatprep.subr.bf16.mxu0 %v1845_v4 }
  0x78   : > { %1491 = vmatmul.mubr.msk.bf16.vlgmr.msra.gmra.mrb[4].mxu0 %vm373_vm4, %v590_v46  ;;  %v981_v46 = vld [vmem:[%s1974_s20 + $0xe] sm:$0x1] }
  0x79   : > { %1495 = vmatpush3.bf16.msra.mxu0 %v2026_v18  ;;  %1498 = vmatprep.mubr.msk.bf16.mxu0 %vm1846_vm1, %v1845_v4 }
  0x7a   : > { %1496 = vmatprep.subr.bf16.mxu0 %v1845_v4 }
  0x7d   : > { %1497 = vmatpush3.bf16.msra.mxu0 %v2036_v19 }
  0x7e   : > { %1522 = vmatprep.subr.bf16.mxu0 %v1845_v4 }
 0x13b   : > { %v471_v31 = vpop.f32.mrb[0].mxu0 }
 0x13c   : > { %v1610_v32 = vadd.f32 %v2067_v30, %v471_v31  ;;  %v1460_v33 = vpop.f32.mrb[1].mxu0  ;;  %v883_v31 = vpack.c.bf16 %v881_v29, %v881_v29 }
 0x13d   : > { %v474_v34 = vpop.f32.mrb[2].mxu0 }
 0x13e   : > { %1721 = vtanh.f32 %v1610_v32  ;;  %v1461_v35 = vpop.f32.mrb[3].mxu0  ;;  %v880_v32 = vld [vmem:[%s1974_s20 + $0x5] sm:$0x1]  ;;  %v887_v34 = vunpack.c.l.b16 %v883_v31 }
 0x13f   : > { %v882_v33 = vpack.c.bf16 %v880_v32, %v880_v32 }
 0x141   : > { %v886_v35 = vunpack.c.l.b16 %v882_v33 }
 0x148   : > { %v1722_v36 = vpop.eup %1721 }
 0x149   : > { %v479_v37 = vpack.c.bf16 %v1722_v36, %v1722_v36  ;;  %v888_v36 = vrot.slane %v887_v34, 7 }
 0x14b   : > { %1479 = vmatmul.mubr.msk.bf16.vlgmr.msra.gmra.mrb[0].mxu1 %vm433_vm5, %v479_v37  ;;  %v889_v37 = vsel %vm349_vm3, %v888_v36, %v886_v35 }
 0x14c   : > { %1503 = vmatpush3.bf16.msra.mxu1 %v1984_v3  ;;  %1510 = vmatprep.mubr.msk.bf16.mxu1 %vm1846_vm1, %v1845_v4  ;;  %v890_v38 = vpack.c.b16 %v889_v37, %v889_v37 }
 0x14d   : > { %1504 = vmatprep.subr.bf16.mxu1 %v1845_v4 }
 0x150   : > { %1505 = vmatpush3.bf16.msra.mxu1 %v1992_v5 }
 0x151   : > { %1506 = vmatprep.subr.bf16.mxu1 %v1845_v4 }
 0x154   : > { %1507 = vmatpush3.bf16.msra.mxu1 %v2007_v10 }
 0x155   : > { %1508 = vmatprep.subr.bf16.mxu1 %v1845_v4 }
 0x158   : > { %1509 = vmatpush3.bf16.msra.mxu1 %v2018_v15 }
 0x159   : > { %1514 = vmatprep.subr.bf16.mxu1 %v1845_v4 }
 0x15b   : > { %1511 = vmatmul.mubr.msk.bf16.vlgmr.msra.gmra.mrb[4].mxu1 %vm373_vm4, %v690_v62  ;;  %v1087_v62 = vunpack.c.l.b16 %v1083_v59 }
 0x15c   : > { %1515 = vmatpush3.bf16.msra.mxu1 %v2026_v18  ;;  %1518 = vmatprep.mubr.msk.bf16.mxu1 %vm1846_vm1, %v1845_v4 }
 0x15d   : > { %1516 = vmatprep.subr.bf16.mxu1 %v1845_v4 }
 0x160   : > { %1517 = vmatpush3.bf16.msra.mxu1 %v2036_v19 }
 0x161   : > { %1542 = vmatprep.subr.bf16.mxu1 %v1845_v4 }
 0x21e   : > { %v571_v47 = vpop.f32.mrb[0].mxu1 }
 0x21f   : > { %v1611_v48 = vadd.f32 %v2067_v30, %v571_v47  ;;  %v1480_v49 = vpop.f32.mrb[1].mxu1  ;;  %v983_v47 = vpack.c.bf16 %v981_v46, %v981_v46 }
 0x220   : > { %v574_v50 = vpop.f32.mrb[2].mxu1 }
 0x221   : > { %1723 = vtanh.f32 %v1611_v48  ;;  %v1481_v51 = vpop.f32.mrb[3].mxu1  ;;  %v987_v49 = vunpack.c.l.b16 %v983_v47 }
 0x223   : > { %v988_v51 = vrot.slane %v987_v49, 7 }
 0x22b   : > { %v1724_v52 = vpop.eup %1723 }
 0x22c   : > { %v579_v53 = vpack.c.bf16 %v1724_v52, %v1724_v52 }
 0x22e   : > { %1499 = vmatmul.mubr.msk.bf16.vlgmr.msra.gmra.mrb[4].mxu0 %vm433_vm5, %v579_v53 }
 0x22f   : > { %1523 = vmatpush3.bf16.msra.mxu0 %v1984_v3  ;;  %1530 = vmatprep.mubr.msk.bf16.mxu0 %vm1846_vm1, %v1845_v4 }
 0x230   : > { %1524 = vmatprep.subr.bf16.mxu0 %v1845_v4 }
 0x233   : > { %1525 = vmatpush3.bf16.msra.mxu0 %v1992_v5 }
 0x234   : > { %1526 = vmatprep.subr.bf16.mxu0 %v1845_v4 }
 0x237   : > { %1527 = vmatpush3.bf16.msra.mxu0 %v2007_v10 }
 0x238   : > { %1528 = vmatprep.subr.bf16.mxu0 %v1845_v4 }
 0x23b   : > { %1529 = vmatpush3.bf16.msra.mxu0 %v2018_v15 }
 0x23c   : > { %1534 = vmatprep.subr.bf16.mxu0 %v1845_v4 }
 0x23e   : > { %1531 = vmatmul.mubr.msk.bf16.vlgmr.msra.gmra.mrb[8].mxu0 %vm373_vm4, %v790_v21  ;;  %v1737_v21 = vld [vmem:[#allocation4] sm:$0xff] (!%p1366_p10)  }
 0x23f   : > { %1535 = vmatpush3.bf16.msra.mxu0 %v2026_v18  ;;  %1538 = vmatprep.mubr.msk.bf16.mxu0 %vm1846_vm1, %v1845_v4 }
 0x240   : > { %1536 = vmatprep.subr.bf16.mxu0 %v1845_v4 }
 0x243   : > { %1537 = vmatpush3.bf16.msra.mxu0 %v2036_v19 }
 0x244   : > { %1562 = vmatprep.subr.bf16.mxu0 %v1845_v4 }
 0x301   : > { %v671_v63 = vpop.f32.mrb[4].mxu0 }
 0x302   : > { %v1612_v0 = vadd.f32 %v2067_v30, %v671_v63  ;;  %v1500_v1 = vpop.f32.mrb[5].mxu0  ;;  %v1086_v63 = vunpack.c.l.b16 %v1082_v61 }
 0x303   : > { %v674_v2 = vpop.f32.mrb[6].mxu0 }
 0x304   : > { %1725 = vtanh.f32 %v1612_v0  ;;  %v1501_v6 = vpop.f32.mrb[7].mxu0  ;;  %v1088_v0 = vrot.slane %v1087_v62, 7 }
 0x306   : > { %v1089_v1 = vsel %vm349_vm3, %v1088_v0, %v1086_v63 }
 0x307   : > { %v1090_v2 = vpack.c.b16 %v1089_v1, %v1089_v1 }
 0x30e   : > { %v1726_v7 = vpop.eup %1725 }
 0x30f   : > { %v679_v8 = vpack.c.bf16 %v1726_v7, %v1726_v7 }
 0x311   : > { %1519 = vmatmul.mubr.msk.bf16.vlgmr.msra.gmra.mrb[4].mxu1 %vm433_vm5, %v679_v8 }
 0x312   : > { %1543 = vmatpush3.bf16.msra.mxu1 %v1984_v3  ;;  %1550 = vmatprep.mubr.msk.bf16.mxu1 %vm1846_vm1, %v1845_v4 }
 0x313   : > { %1544 = vmatprep.subr.bf16.mxu1 %v1845_v4 }
 0x316   : > { %1545 = vmatpush3.bf16.msra.mxu1 %v1992_v5 }
 0x317   : > { %1546 = vmatprep.subr.bf16.mxu1 %v1845_v4 }
 0x31a   : > { %1547 = vmatpush3.bf16.msra.mxu1 %v2007_v10 }
 0x31b   : > { %1548 = vmatprep.subr.bf16.mxu1 %v1845_v4 }
 0x31e   : > { %1549 = vmatpush3.bf16.msra.mxu1 %v2018_v15 }
 0x31f   : > { %1554 = vmatprep.subr.bf16.mxu1 %v1845_v4 }
 0x321   : > { %1551 = vmatmul.mubr.msk.bf16.vlgmr.msra.gmra.mrb[8].mxu1 %vm373_vm4, %v890_v38 }
 0x322   : > { %1555 = vmatpush3.bf16.msra.mxu1 %v2026_v18  ;;  %1558 = vmatprep.mubr.msk.bf16.mxu1 %vm1846_vm1, %v1845_v4 }
 0x323   : > { %1556 = vmatprep.subr.bf16.mxu1 %v1845_v4 }
 0x326   : > { %1557 = vmatpush3.bf16.msra.mxu1 %v2036_v19 }
 0x327   : > { %1582 = vmatprep.subr.bf16.mxu1 %v1845_v4 }
 0x3e4   : > { %v771_v22 = vpop.f32.mrb[4].mxu1 }
 0x3e5   : > { %v1613_v23 = vadd.f32 %v2067_v30, %v771_v22  ;;  %v1520_v24 = vpop.f32.mrb[5].mxu1  ;;  %v1847_v22 = vmov (!%p1366_p10), 0.0  }
 0x3e6   : > { %v774_v25 = vpop.f32.mrb[6].mxu1  ;;  %v1367_v24 = vld [vmem:[%s2245_s5] ss:$0 sm:$0xff] (!%p1366_p10) }
 0x3e7   : > { %1727 = vtanh.f32 %v1613_v23  ;;  %v1521_v26 = vpop.f32.mrb[7].mxu1  ;;  %v1738_v23 = vld [vmem:[#allocation4 + $0x8] sm:$0xff] (!%p1366_p10)  }
 0x3f1   : > { %v1728_v27 = vpop.eup %1727 }
 0x3f2   : > { %v779_v28 = vpack.c.bf16 %v1728_v27, %v1728_v27 }
 0x3f4   : > { %1539 = vmatmul.mubr.msk.bf16.vlgmr.msra.gmra.mrb[8].mxu0 %vm433_vm5, %v779_v28 }
 0x3f5   : > { %1563 = vmatpush3.bf16.msra.mxu0 %v1984_v3  ;;  %1570 = vmatprep.mubr.msk.bf16.mxu0 %vm1846_vm1, %v1845_v4 }
 0x3f6   : > { %1564 = vmatprep.subr.bf16.mxu0 %v1845_v4 }
 0x3f9   : > { %1565 = vmatpush3.bf16.msra.mxu0 %v1992_v5 }
 0x3fa   : > { %1566 = vmatprep.subr.bf16.mxu0 %v1845_v4 }
 0x3fd   : > { %1567 = vmatpush3.bf16.msra.mxu0 %v2007_v10 }
 0x3fe   : > { %1568 = vmatprep.subr.bf16.mxu0 %v1845_v4 }
 0x401   : > { %1569 = vmatpush3.bf16.msra.mxu0 %v2018_v15 }
 0x402   : > { %1574 = vmatprep.subr.bf16.mxu0 %v1845_v4 }
 0x4c7   : > { %v871_v39 = vpop.f32.mrb[8].mxu0 }
 0x4c8   : > { %v1614_v40 = vadd.f32 %v2067_v30, %v871_v39  ;;  %v1540_v41 = vpop.f32.mrb[9].mxu0 }
 0x4c9   : > { %v874_v42 = vpop.f32.mrb[10].mxu0 }
 0x4ca   : > { %1729 = vtanh.f32 %v1614_v40  ;;  %v1541_v43 = vpop.f32.mrb[11].mxu0 }
 0x4d4   : > { %v1730_v44 = vpop.eup %1729 }
 0x4d5   : > { %v879_v45 = vpack.c.bf16 %v1730_v44, %v1730_v44 }
 0x4d7   : > { %1559 = vmatmul.mubr.msk.bf16.vlgmr.msra.gmra.mrb[8].mxu1 %vm433_vm5, %v879_v45 }
 0x4d8   : > { %1583 = vmatpush3.bf16.msra.mxu1 %v1984_v3  ;;  %1590 = vmatprep.mubr.msk.bf16.mxu1 %vm1846_vm1, %v1845_v4  ;;  %v980_v3 = vld [vmem:[%s1974_s20 + $0x6] sm:$0x1] }
 0x4d9   : > { %1584 = vmatprep.subr.bf16.mxu1 %v1845_v4  ;;  %v982_v48 = vpack.c.bf16 %v980_v3, %v980_v3 }
 0x4db   : > { %v986_v50 = vunpack.c.l.b16 %v982_v48 }
 0x4dc   : > { %1585 = vmatpush3.bf16.msra.mxu1 %v1992_v5 }
 0x4dd   : > { %1586 = vmatprep.subr.bf16.mxu1 %v1845_v4  ;;  %v989_v52 = vsel %vm349_vm3, %v988_v51, %v986_v50 }
 0x4de   : > { %v990_v5 = vpack.c.b16 %v989_v52, %v989_v52 }
 0x4e0   : > { %1587 = vmatpush3.bf16.msra.mxu1 %v2007_v10  ;;  %1571 = vmatmul.mubr.msk.bf16.vlgmr.msra.gmra.mrb[12].mxu0 %vm373_vm4, %v990_v5 }
 0x4e1   : > { %1588 = vmatprep.subr.bf16.mxu1 %v1845_v4  ;;  %1575 = vmatpush3.bf16.msra.mxu0 %v2026_v18 }
 0x4e2   : > { %1578 = vmatprep.mubr.msk.bf16.mxu0 %vm1846_vm1, %v1845_v4  ;;  %1576 = vmatprep.subr.bf16.mxu0 %v1845_v4 }
 0x4e4   : > { %1589 = vmatpush3.bf16.msra.mxu1 %v2018_v15 }
 0x4e5   : > { %1594 = vmatprep.subr.bf16.mxu1 %v1845_v4  ;;  %1577 = vmatpush3.bf16.msra.mxu0 %v2036_v19 }
 0x4e6   : > { %1602 = vmatprep.subr.bf16.mxu0 (!%p1366_p10), %v1847_v22 }
 0x4e7   : > { %1591 = vmatmul.mubr.msk.bf16.vlgmr.msra.gmra.mrb[12].mxu1 %vm373_vm4, %v1090_v2 }
 0x4e8   : > { %1595 = vmatpush3.bf16.msra.mxu1 %v2026_v18  ;;  %1598 = vmatprep.mubr.msk.bf16.mxu1 %vm1846_vm1, %v1845_v4 }
 0x4e9   : > { %1596 = vmatprep.subr.bf16.mxu1 %v1845_v4 }
 0x4ec   : > { %1597 = vmatpush3.bf16.msra.mxu1 %v2036_v19 }
 0x5aa   : > { %v971_v10 = vpop.f32.mrb[8].mxu1 }
 0x5ab   : > { %v1615_v15 = vadd.f32 %v2067_v30, %v971_v10  ;;  %v1560_v53 = vpop.f32.mrb[9].mxu1 }
 0x5ac   : > { %v974_v54 = vpop.f32.mrb[10].mxu1 }
 0x5ad   : > { %1731 = vtanh.f32 %v1615_v15  ;;  %v1561_v55 = vpop.f32.mrb[11].mxu1 }
 0x5b7   : > { %v1732_v56 = vpop.eup %1731 }
 0x5b8   : > { %v979_v57 = vpack.c.bf16 %v1732_v56, %v1732_v56 }
 0x5ba   : > { %1579 = vmatmul.mubr.msk.bf16.vlgmr.msra.gmra.mrb[12].mxu0 %vm433_vm5, %v979_v57 }
 0x5bb   : > { %1603 = vmatpush3.bf16.msra.mxu0 (!%p1366_p10), %v1737_v21  ;;  %1606 = vmatprep.mubr.msk.bf16.mxu0 (!%p1366_p10), %vm1848_vm7, %v1847_v22 }
 0x5bc   : > { %1604 = vmatprep.subr.bf16.mxu0 (!%p1366_p10), %v1847_v22 }
 0x5bf   : > { %1605 = vmatpush3.bf16.msra.mxu0 (!%p1366_p10), %v1738_v23 }
 0x68d   : > { %v1071_v6 = vpop.f32.mrb[12].mxu0 }
 0x68e   : > { %v1616_v7 = vadd.f32 %v2067_v30, %v1071_v6  ;;  %v1580_v8 = vpop.f32.mrb[13].mxu0 }
 0x68f   : > { %v1074_v9 = vpop.f32.mrb[14].mxu0 }
 0x690   : > { %1733 = vtanh.f32 %v1616_v7  ;;  %v1581_v11 = vpop.f32.mrb[15].mxu0 }
 0x69a   : > { %v1734_v12 = vpop.eup %1733 }
 0x69b   : > { %v1079_v13 = vpack.c.bf16 %v1734_v12, %v1734_v12 }
 0x69d   : > { %1599 = vmatmul.mubr.msk.bf16.vlgmr.msra.gmra.mrb[12].mxu1 %vm433_vm5, %v1079_v13 }
 0x770   : > { %v1171_v14 = vpop.f32.mrb[12].mxu1 }
 0x771   : > { %v1617_v18 = vadd.f32 %v2067_v30, %v1171_v14  ;;  %v1600_v16 = vpop.f32.mrb[13].mxu1 }
 0x772   : > { %v1174_v17 = vpop.f32.mrb[14].mxu1 }
 0x773   : > { %1735 = vtanh.f32 %v1617_v18  ;;  %v1601_v4 = vpop.f32.mrb[15].mxu1 }
 0x77a   : > { %1185 = sbr.rel (%p1366_p10) target bundleno = 2143 (0x85f), region = 94 }
 0x77d   : > { %v1736_v20 = vpop.eup %1735 }
 0x77e   : > { %v1179_v19 = vpack.c.bf16 %v1736_v20, %v1736_v20 }
 0x780   : > { %1181 = vst.msk [vmem:[#allocation2] sm:$0x1] %vm1180_vm6, %v1179_v19 }
 0x787   : > { %v1186_v30 = vld [vmem:[#allocation2] sm:$0x1] }
 0x788   : > { %1607 = vmatmul.mubr.msk.bf16.vlgmr.msra.gmra.mrb[0].mxu0 %vm433_vm5, %v1186_v30 }
 0x85b   : > { %v1247_v25 = vpop.f32.mrb[0].mxu0 }
 0x85c   : > { %v1248_v26 = vadd.f32 %v1367_v24, %v1247_v25  ;;  %v1608_v27 = vpop.f32.mrb[1].mxu0 }
 0x85d   : > { %v1250_v28 = vpop.f32.mrb[2].mxu0 }
 0x85e   : > { %1253 = vst [vmem:[#allocation7] sm:$0x3] %v1248_v26  ;;  %v1609_v29 = vpop.f32.mrb[3].mxu0 }
 0x85f PF: > { %p2199_p12 = scmp.eq.s32.totalorder %s1333_s26, 1  ;;  %s1849_s20 = smov [#allocation7]  }
 0x860   : > { %s1263_s7 = sshll.u32 %s1849_s20, 4  ;;  %s1264_s7 = int_to_ptr.vmem [resolvable:$true] %s1263_s7 }
 0x861   : > { %s1767_s28 = scalar_lea.vmem %s1264_s7, 32  ;;  %p1774_p4 = scmp.lt.s32.totalorder %s1264_s7, %s1264_s7 }
 0x862   : > { %p1768_p0 = scmp.ne.s32.totalorder %s1264_s7, %s1767_s28  ;;  %p1775_p5 = scmp.lt.s32.totalorder %s1767_s28, %s1767_s28 }
 0x864   : > { %p1769_p1 = pnand %p1768_p0, %p2199_p12  ;;  %p1776_p6 = por %p1775_p5, %p1774_p4 }
 0x866   : > { %p1770_p2 = pneg %p1769_p1 }
 0x868   : > { %p1777_p9 = pnand %p1776_p6, %p1770_p2 }
 0x86a   : > { %1780 = shalt.err (!%p1777_p9)
}
 0x86b   : > { %s1781_s26 = scalar_lea.hbm %s2246_s6, 32 }
 0x86c   : > { %p1782_p11 = scmp.ne.s32.totalorder %s2246_s6, %s1781_s26  ;;  %p1787_p7 = scmp.lt.u32.totalorder %s1781_s26, %s2246_s6 }
 0x86e   : > { %p1783_p13 = pnand %p1782_p11, %p2199_p12 }
 0x870   : > { %p1784_p3 = pneg %p1783_p13 }
 0x872   : > { %p1789_p8 = pnand %p1787_p7, %p1784_p3 }
 0x874   : > { %1792 = shalt.err (!%p1789_p8)
}
 0x875   : > { %1655 = dma.vmem_to_hbm [thread:$0]  (%p2199_p12), %s1264_s7, 32, %s2246_s6, [#allocation6]  }
 0x876   : > { %1818 = dma.done.wait (%p2199_p12), [#allocation6], 32  }
 0x877   : > { %1820 = vsyncadd (%p2199_p12), [#allocation6], 4294967264 }
 0x878 PF: > { %s18_s25 = sadd.s32 1, %s1839_s25   ;;  %s2258_s21 = smov %s1827_s22 }
 0x879   : > { %p15_p10 = scmp.ge.s32.totalorder %s18_s25, 4   ;;  %s2259_s22 = smov %s1937_s9 }
 0x87a   : > { %s2260_s23 = smov %s1835_s24  ;;  %s2261_s24 = smov %s2263_s27 }
 0x87b   :  { %17 = sbr.rel (!%p15_p10) target bundleno = 4 (0x4), region = 128 }
 0x882   :  { %1276 = vsyncpa [#allocation5], 1 }
 0x883   :  { %1278 = vsyncpa [#allocation5 + $0x1], 1 }
 0x884   :  { %1279 = vsyncpa [#allocation6], 1 }
 0x885   :  { %1281 = vsyncpa [#allocation6 + $0x1], 1 }

</bundles_post_ra>
